<compile_context>
chip_gen: v5e
topology: v5e:2x2
jax: 0.10.0
libtpu: 0.0.40
codegen_flags: <defaults>
</compile_context>

<pallas_src>
import functools

import jax
import jax.numpy as jnp
from jax import lax
from jax.experimental import pallas as pl
from jax.experimental.pallas import tpu as pltpu


def _fused_recurrent_fwd_kernel(q_ref, k_ref, v_ref, o_ref, h_ref, *,
                                scale, num_heads, head_dim):
    """One (batch, seq-chunk) grid step of chunked linear attention.

    q_ref/k_ref/v_ref/o_ref: [1, C, H*D] tiles (input dtype, lane-dense).
    h_ref: [H, D, D] float32 carried state (scratch, persists across chunk axis).
    """
    c = pl.program_id(1)

    @pl.when(c == 0)
    def _():
        h_ref[...] = jnp.zeros_like(h_ref)

    C = q_ref.shape[1]
    # Inline causal mask (diagonal included: state is updated before o_t read,
    # matching the reference recurrence). VPU compare/select is free here.
    row = lax.broadcasted_iota(jnp.int32, (C, C), 0)
    col = lax.broadcasted_iota(jnp.int32, (C, C), 1)
    causal = row >= col

    # Load the full [C, H*D] slabs once; per-head static lane slices below.
    q_all = q_ref[0]
    k_all = k_ref[0]
    v_all = v_ref[0]

    outs = []
    for h in range(num_heads):
        lo, hi = h * head_dim, (h + 1) * head_dim
        q_h = q_all[:, lo:hi]          # [C, D], input dtype (bf16 fast MXU path)
        k_h = k_all[:, lo:hi]          # [C, D]
        v_h = v_all[:, lo:hi]          # [C, D]
        h_prev = h_ref[h]              # [D, D], f32 master accumulator

        # Intra-chunk causal term: s = q @ k^T (contract D), f32 accumulate.
        s = lax.dot_general(q_h, k_h, (((1,), (1,)), ((), ())),
                            preferred_element_type=jnp.float32)      # [C, C]
        s = jnp.where(causal, s, 0.0)
        o_intra = jnp.dot(s.astype(v_h.dtype), v_h,
                          preferred_element_type=jnp.float32)         # [C, D]

        # Inter-chunk term from the carried state (bf16 read of f32 state).
        o_inter = jnp.dot(q_h, h_prev.astype(q_h.dtype),
                          preferred_element_type=jnp.float32)         # [C, D]

        outs.append(o_intra + o_inter)

        # State update for the next chunk: h += k^T @ v (contract C), f32 acc.
        h_ref[h] = h_prev + lax.dot_general(
            k_h, v_h, (((0,), (0,)), ((), ())),
            preferred_element_type=jnp.float32)

    # Single lane-dense [C, H*D] store.
    o_full = outs[0] if num_heads == 1 else jnp.concatenate(outs, axis=-1)
    o_ref[0] = (o_full * scale).astype(o_ref.dtype)


def _pick_chunk(S, target=128):
    """Largest chunk <= target dividing S that is sublane-legal (mult of 8)."""
    for c in range(min(S, target), 7, -1):
        if S % c == 0 and c % 8 == 0:
            return c
    return S  # full-sequence block is always layout-legal


def fused_recurrent_linear_attention(q, k, v, scale=None, *, chunk=None):
    """q, k, v: [B, S, H, D]. Returns o: [B, S, H, D] (same dtype as q)."""
    B, S, H, D = q.shape
    if scale is None:
        scale = float(D) ** (-0.5)
    if chunk is None:
        chunk = _pick_chunk(S)
    assert S % chunk == 0, "seq_len must be divisible by the chunk size"

    # Free, contiguous reshapes (no transposes / layout copies).
    qf = q.reshape(B, S, H * D)
    kf = k.reshape(B, S, H * D)
    vf = v.reshape(B, S, H * D)

    grid = (B, S // chunk)
    block = (1, chunk, H * D)
    spec = pl.BlockSpec(block, lambda b, c: (b, c, 0))

    itemsize = jnp.dtype(q.dtype).itemsize
    cost = pl.CostEstimate(
        flops=4 * B * H * S * D * (chunk + D),
        transcendentals=0,
        bytes_accessed=4 * B * S * H * D * itemsize,
    )

    out = pl.pallas_call(
        functools.partial(_fused_recurrent_fwd_kernel, scale=scale,
                          num_heads=H, head_dim=D),
        out_shape=jax.ShapeDtypeStruct((B, S, H * D), q.dtype),
        grid_spec=pltpu.PrefetchScalarGridSpec(
            num_scalar_prefetch=0,
            grid=grid,
            in_specs=[spec, spec, spec],
            out_specs=spec,
            scratch_shapes=[
                pltpu.VMEM((H, D, D), jnp.float32),   # carried k^T v state, all heads
            ],
        ),
        compiler_params=pltpu.CompilerParams(
            dimension_semantics=("parallel", "arbitrary"),
        ),
        cost_estimate=cost,
    )(qf, kf, vf)

    return out.reshape(B, S, H, D)


def _reference(q, k, v, scale=None):
    """Pure-JAX per-timestep recurrence (mirrors the PyTorch/TileLang kernel)."""
    B, S, H, D = q.shape
    if scale is None:
        scale = float(D) ** (-0.5)
    qf = q.astype(jnp.float32) * scale
    kf = k.astype(jnp.float32)
    vf = v.astype(jnp.float32)

    def step(h, xs):
        q_t, k_t, v_t = xs                      # each [B, H, D]
        h = h + jnp.einsum("bhk,bhv->bhkv", k_t, v_t)
        o_t = jnp.einsum("bhk,bhkv->bhv", q_t, h)
        return h, o_t

    h0 = jnp.zeros((B, H, D, D), jnp.float32)
    xs = (qf.transpose(1, 0, 2, 3), kf.transpose(1, 0, 2, 3),
          vf.transpose(1, 0, 2, 3))
    _, o = lax.scan(step, h0, xs)               # o: [S, B, H, D]
    return o.transpose(1, 0, 2, 3).astype(q.dtype)


class LinearAttentionFusedRecurrentKernel:
    """JAX/Pallas counterpart of the PyTorch module (forward only)."""

    def __init__(self, batch_size, seq_len, num_heads, head_dim,
                 dtype="bfloat16", block_K=32, block_V=32):
        # block_K / block_V were GPU tiling knobs; the TPU kernel keeps the full
        # head_dim resident and tiles the sequence instead.
        self.batch_size = batch_size
        self.seq_len = seq_len
        self.num_heads = num_heads
        self.head_dim = head_dim
        self._dtype = {"float16": jnp.float16,
                       "bfloat16": jnp.bfloat16,
                       "float32": jnp.float32}[dtype]
        self.block_K = block_K
        self.block_V = block_V

    def __call__(self, q, k, v, scale=None):
        return fused_recurrent_linear_attention(q, k, v, scale)


if __name__ == "__main__":
    B, S, H, D = 2, 128, 2, 64
    dtype = jnp.bfloat16

    key = jax.random.PRNGKey(0)
    kq, kk, kv = jax.random.split(key, 3)
    q = jax.random.normal(kq, (B, S, H, D), dtype=jnp.float32).astype(dtype)
    k = jax.random.normal(kk, (B, S, H, D), dtype=jnp.float32).astype(dtype)
    v = jax.random.normal(kv, (B, S, H, D), dtype=jnp.float32).astype(dtype)

    mod = LinearAttentionFusedRecurrentKernel(B, S, H, D, dtype="bfloat16")
    out = mod(q, k, v)
    out = jax.block_until_ready(out)

    ref = _reference(q, k, v)
    assert out.shape == (B, S, H, D) and out.dtype == dtype

    out_f = out.astype(jnp.float32)
    ref_f = ref.astype(jnp.float32)
    abs_err = float(jnp.max(jnp.abs(out_f - ref_f)))
    rel_err = abs_err / max(1.0, float(jnp.max(jnp.abs(ref_f))))
    assert rel_err < 2e-2, (
        f"mismatch vs reference: max abs err={abs_err}, rel err={rel_err}")

    print("KERNEL_OK")
</pallas_src>

<mosaic_0001>
module attributes {stable_mosaic.version = 11 : i64} {
  func.func @_fused_recurrent_fwd_kernel(%arg0: i32, %arg1: i32, %arg2: memref<1x128x128xbf16, #tpu.memory_space<vmem>>, %arg3: memref<1x128x128xbf16, #tpu.memory_space<vmem>>, %arg4: memref<1x128x128xbf16, #tpu.memory_space<vmem>>, %arg5: memref<1x128x128xbf16, #tpu.memory_space<vmem>>, %arg6: memref<2x64x64xf32, #tpu.memory_space<vmem>>) attributes {dimension_semantics = [#tpu.dimension_semantics<parallel>, #tpu.dimension_semantics<arbitrary>], iteration_bounds = array<i64: 2, 1>, scalar_prefetch = 0 : i64, scratch_operands = 1 : i64, tpu.core_type = #tpu.core_type<tc>, window_params = [{transform_indices = @transform_0, window_bounds = array<i64: 1, 128, 128>}, {transform_indices = @transform_1, window_bounds = array<i64: 1, 128, 128>}, {transform_indices = @transform_2, window_bounds = array<i64: 1, 128, 128>}, {transform_indices = @transform_3, window_bounds = array<i64: 1, 128, 128>}]} {
    %c0_i32 = arith.constant 0 : i32
    %0 = arith.cmpi eq, %arg1, %c0_i32 : i32
    %1 = arith.extui %0 : i1 to i32
    %c0_i32_0 = arith.constant 0 : i32
    %2 = arith.cmpi ne, %1, %c0_i32_0 : i32
    scf.if %2 {
      %cst_33 = arith.constant 0.000000e+00 : f32
      %55 = vector.broadcast %cst_33 : f32 to vector<2x64x64xf32>
      %c0_34 = arith.constant 0 : index
      %c0_35 = arith.constant 0 : index
      %c0_36 = arith.constant 0 : index
      %56 = vector.load %arg6[%c0_34, %c0_35, %c0_36] : memref<2x64x64xf32, #tpu.memory_space<vmem>>, vector<2x64x64xf32>
      tpu.vector_store %arg6[%c0_34, %c0_35, %c0_36], %55 {strides = array<i32>} : memref<2x64x64xf32, #tpu.memory_space<vmem>>, vector<2x64x64xf32>,
    } else {
    }
    %3 = tpu.iota {dimensions = array<i32: 0>} : vector<128x128xi32>
    %4 = tpu.iota {dimensions = array<i32: 1>} : vector<128x128xi32>
    %5 = arith.cmpi sge, %3, %4 : vector<128x128xi32>
    %c0 = arith.constant 0 : index
    %c0_1 = arith.constant 0 : index
    %c0_2 = arith.constant 0 : index
    %6 = vector.load %arg2[%c0, %c0_1, %c0_2] : memref<1x128x128xbf16, #tpu.memory_space<vmem>>, vector<1x128x128xbf16>
    %7 = vector.shape_cast %6 : vector<1x128x128xbf16> to vector<128x128xbf16>
    %c0_3 = arith.constant 0 : index
    %c0_4 = arith.constant 0 : index
    %c0_5 = arith.constant 0 : index
    %8 = vector.load %arg3[%c0_3, %c0_4, %c0_5] : memref<1x128x128xbf16, #tpu.memory_space<vmem>>, vector<1x128x128xbf16>
    %9 = vector.shape_cast %8 : vector<1x128x128xbf16> to vector<128x128xbf16>
    %c0_6 = arith.constant 0 : index
    %c0_7 = arith.constant 0 : index
    %c0_8 = arith.constant 0 : index
    %10 = vector.load %arg4[%c0_6, %c0_7, %c0_8] : memref<1x128x128xbf16, #tpu.memory_space<vmem>>, vector<1x128x128xbf16>
    %11 = vector.shape_cast %10 : vector<1x128x128xbf16> to vector<128x128xbf16>
    %12 = vector.extract_strided_slice %7 {offsets = [0, 0], sizes = [128, 64], strides = [1, 1]} : vector<128x128xbf16> to vector<128x64xbf16>
    %13 = vector.extract_strided_slice %9 {offsets = [0, 0], sizes = [128, 64], strides = [1, 1]} : vector<128x128xbf16> to vector<128x64xbf16>
    %14 = vector.extract_strided_slice %11 {offsets = [0, 0], sizes = [128, 64], strides = [1, 1]} : vector<128x128xbf16> to vector<128x64xbf16>
    %c0_9 = arith.constant 0 : index
    %c0_10 = arith.constant 0 : index
    %c0_11 = arith.constant 0 : index
    %15 = vector.load %arg6[%c0_9, %c0_10, %c0_11] : memref<2x64x64xf32, #tpu.memory_space<vmem>>, vector<1x64x64xf32>
    %16 = vector.shape_cast %15 : vector<1x64x64xf32> to vector<64x64xf32>
    %cst = arith.constant dense<0.000000e+00> : vector<128x128xf32>
    %17 = tpu.matmul %12, %13, %cst {dimension_numbers = #tpu.dot_dimension_numbers<[1], [1], [0], [0], [0, 0, 1, 0], [], []>} : vector<128x64xbf16>, vector<128x64xbf16>, vector<128x128xf32> -> vector<128x128xf32>
    %cst_12 = arith.constant 0.000000e+00 : f32
    %18 = vector.broadcast %cst_12 : f32 to vector<128x128xf32>
    %19 = arith.select %5, %17, %18 : vector<128x128xi1>, vector<128x128xf32>
    %20 = arith.truncf %19 : vector<128x128xf32> to vector<128x128xbf16>
    %cst_13 = arith.constant dense<0.000000e+00> : vector<128x64xf32>
    %21 = tpu.matmul %20, %14, %cst_13 {dimension_numbers = #tpu.dot_dimension_numbers<[1], [0], [0], [1], [0, 0, 1, 1], [], []>} : vector<128x128xbf16>, vector<128x64xbf16>, vector<128x64xf32> -> vector<128x64xf32>
    %22 = arith.truncf %16 : vector<64x64xf32> to vector<64x64xbf16>
    %cst_14 = arith.constant dense<0.000000e+00> : vector<128x64xf32>
    %23 = tpu.matmul %12, %22, %cst_14 {dimension_numbers = #tpu.dot_dimension_numbers<[1], [0], [0], [1], [0, 0, 1, 1], [], []>} : vector<128x64xbf16>, vector<64x64xbf16>, vector<128x64xf32> -> vector<128x64xf32>
    %24 = arith.addf %21, %23 : vector<128x64xf32>
    %cst_15 = arith.constant dense<0.000000e+00> : vector<64x64xf32>
    %25 = tpu.matmul %13, %14, %cst_15 {dimension_numbers = #tpu.dot_dimension_numbers<[0], [0], [1], [1], [0, 1, 1, 1], [], []>} : vector<128x64xbf16>, vector<128x64xbf16>, vector<64x64xf32> -> vector<64x64xf32>
    %26 = arith.addf %16, %25 : vector<64x64xf32>
    %c0_16 = arith.constant 0 : index
    %c0_17 = arith.constant 0 : index
    %c0_18 = arith.constant 0 : index
    %27 = vector.load %arg6[%c0_16, %c0_17, %c0_18] : memref<2x64x64xf32, #tpu.memory_space<vmem>>, vector<1x64x64xf32>
    %28 = vector.shape_cast %27 : vector<1x64x64xf32> to vector<64x64xf32>
    %29 = vector.shape_cast %26 : vector<64x64xf32> to vector<1x64x64xf32>
    tpu.vector_store %arg6[%c0_16, %c0_17, %c0_18], %29 {strides = array<i32>} : memref<2x64x64xf32, #tpu.memory_space<vmem>>, vector<1x64x64xf32>,
    %30 = vector.extract_strided_slice %7 {offsets = [0, 64], sizes = [128, 64], strides = [1, 1]} : vector<128x128xbf16> to vector<128x64xbf16>
    %31 = vector.extract_strided_slice %9 {offsets = [0, 64], sizes = [128, 64], strides = [1, 1]} : vector<128x128xbf16> to vector<128x64xbf16>
    %32 = vector.extract_strided_slice %11 {offsets = [0, 64], sizes = [128, 64], strides = [1, 1]} : vector<128x128xbf16> to vector<128x64xbf16>
    %c1 = arith.constant 1 : index
    %c0_19 = arith.constant 0 : index
    %c0_20 = arith.constant 0 : index
    %33 = vector.load %arg6[%c1, %c0_19, %c0_20] : memref<2x64x64xf32, #tpu.memory_space<vmem>>, vector<1x64x64xf32>
    %34 = vector.shape_cast %33 : vector<1x64x64xf32> to vector<64x64xf32>
    %cst_21 = arith.constant dense<0.000000e+00> : vector<128x128xf32>
    %35 = tpu.matmul %30, %31, %cst_21 {dimension_numbers = #tpu.dot_dimension_numbers<[1], [1], [0], [0], [0, 0, 1, 0], [], []>} : vector<128x64xbf16>, vector<128x64xbf16>, vector<128x128xf32> -> vector<128x128xf32>
    %cst_22 = arith.constant 0.000000e+00 : f32
    %36 = vector.broadcast %cst_22 : f32 to vector<128x128xf32>
    %37 = arith.select %5, %35, %36 : vector<128x128xi1>, vector<128x128xf32>
    %38 = arith.truncf %37 : vector<128x128xf32> to vector<128x128xbf16>
    %cst_23 = arith.constant dense<0.000000e+00> : vector<128x64xf32>
    %39 = tpu.matmul %38, %32, %cst_23 {dimension_numbers = #tpu.dot_dimension_numbers<[1], [0], [0], [1], [0, 0, 1, 1], [], []>} : vector<128x128xbf16>, vector<128x64xbf16>, vector<128x64xf32> -> vector<128x64xf32>
    %40 = arith.truncf %34 : vector<64x64xf32> to vector<64x64xbf16>
    %cst_24 = arith.constant dense<0.000000e+00> : vector<128x64xf32>
    %41 = tpu.matmul %30, %40, %cst_24 {dimension_numbers = #tpu.dot_dimension_numbers<[1], [0], [0], [1], [0, 0, 1, 1], [], []>} : vector<128x64xbf16>, vector<64x64xbf16>, vector<128x64xf32> -> vector<128x64xf32>
    %42 = arith.addf %39, %41 : vector<128x64xf32>
    %cst_25 = arith.constant dense<0.000000e+00> : vector<64x64xf32>
    %43 = tpu.matmul %31, %32, %cst_25 {dimension_numbers = #tpu.dot_dimension_numbers<[0], [0], [1], [1], [0, 1, 1, 1], [], []>} : vector<128x64xbf16>, vector<128x64xbf16>, vector<64x64xf32> -> vector<64x64xf32>
    %44 = arith.addf %34, %43 : vector<64x64xf32>
    %c1_26 = arith.constant 1 : index
    %c0_27 = arith.constant 0 : index
    %c0_28 = arith.constant 0 : index
    %45 = vector.load %arg6[%c1_26, %c0_27, %c0_28] : memref<2x64x64xf32, #tpu.memory_space<vmem>>, vector<1x64x64xf32>
    %46 = vector.shape_cast %45 : vector<1x64x64xf32> to vector<64x64xf32>
    %47 = vector.shape_cast %44 : vector<64x64xf32> to vector<1x64x64xf32>
    tpu.vector_store %arg6[%c1_26, %c0_27, %c0_28], %47 {strides = array<i32>} : memref<2x64x64xf32, #tpu.memory_space<vmem>>, vector<1x64x64xf32>,
    %48 = tpu.concatenate %24, %42 in 1 : vector<128x64xf32>, vector<128x64xf32> -> vector<128x128xf32>
    %cst_29 = arith.constant 1.250000e-01 : f32
    %49 = vector.broadcast %cst_29 : f32 to vector<128x128xf32>
    %50 = arith.mulf %48, %49 : vector<128x128xf32>
    %51 = arith.truncf %50 : vector<128x128xf32> to vector<128x128xbf16>
    %c0_30 = arith.constant 0 : index
    %c0_31 = arith.constant 0 : index
    %c0_32 = arith.constant 0 : index
    %52 = vector.load %arg5[%c0_30, %c0_31, %c0_32] : memref<1x128x128xbf16, #tpu.memory_space<vmem>>, vector<1x128x128xbf16>
    %53 = vector.shape_cast %52 : vector<1x128x128xbf16> to vector<128x128xbf16>
    %54 = vector.shape_cast %51 : vector<128x128xbf16> to vector<1x128x128xbf16>
    tpu.vector_store %arg5[%c0_30, %c0_31, %c0_32], %54 {strides = array<i32>} : memref<1x128x128xbf16, #tpu.memory_space<vmem>>, vector<1x128x128xbf16>,
    return
  }
  func.func @transform_0(%arg0: i32, %arg1: i32) -> (i32, i32, i32) {
    %c0_i32 = arith.constant 0 : i32
    %c0_i32_0 = arith.constant 0 : i32
    return %arg0, %arg1, %c0_i32 : i32, i32, i32
  }
  func.func @transform_1(%arg0: i32, %arg1: i32) -> (i32, i32, i32) {
    %c0_i32 = arith.constant 0 : i32
    %c0_i32_0 = arith.constant 0 : i32
    return %arg0, %arg1, %c0_i32 : i32, i32, i32
  }
  func.func @transform_2(%arg0: i32, %arg1: i32) -> (i32, i32, i32) {
    %c0_i32 = arith.constant 0 : i32
    %c0_i32_0 = arith.constant 0 : i32
    return %arg0, %arg1, %c0_i32 : i32, i32, i32
  }
  func.func @transform_3(%arg0: i32, %arg1: i32) -> (i32, i32, i32) {
    %c0_i32 = arith.constant 0 : i32
    %c0_i32_0 = arith.constant 0 : i32
    return %arg0, %arg1, %c0_i32 : i32, i32, i32
  }
}

</mosaic_0001>

<bundles_post_ra>
// kernel: tpu_custom_call.1
= control target key start
LH: loop header
LB: loop body
LE: loop exit
PB: predicated region body
PF: predicated region fallthrough
CT: control target
= control target key end

     0   :  { %s2800_s0 = inlined_call_operand.hbm [shape: bf16[2,128,128], index: 0, kind: input, shape index: {}]   ;;  %s2801_s1 = inlined_call_operand.hbm [shape: bf16[2,128,128], index: 1, kind: input, shape index: {}]   ;;  %s2802_s2 = inlined_call_operand.hbm [shape: bf16[2,128,128], index: 2, kind: input, shape index: {}]   ;;  %s2803_s3 = inlined_call_operand.hbm [shape: bf16[2,128,128], index: 3, kind: output, shape index: {}]  }
   0x1   :  { %2809 = sst [smem:[#allocation18_spill]] %s2801_s1 }
   0x2   :  { %8 = vsyncpa [#allocation4], 0 }
   0x3   :  { %10 = vsyncpa [#allocation4 + $0x1], 0 }
   0x4   :  { %11 = vsyncpa [#allocation7], 0 }
   0x5   :  { %13 = vsyncpa [#allocation7 + $0x1], 0 }
   0x6   :  { %14 = vsyncpa [#allocation5], 0 }
   0x7   :  { %16 = vsyncpa [#allocation5 + $0x1], 0  ;;  %s2061_s12 = smov 0   ;;  %s2063_s13 = smov 0  }
   0x8   :  { %s2065_s14 = smov 0   ;;  %s2067_s15 = smov 0  }
   0x9   :  { %s2069_s16 = smov 0   ;;  %s2071_s17 = smov 0  }
   0xa LB: > { %2810 = sst [smem:[#allocation13_spill]] %s2021_s14  ;;  %s2092_s18 = sadd.s32 4294967295, %s2033_s17   ;;  %s2033_s17 = sphi %s2071_s17, %s22_s17   ;;  %s2029_s16 = sphi %s2069_s16, %s2842_s16   ;;  %s2025_s15 = sphi %s2067_s15, %s2841_s15   ;;  %s2021_s14 = sphi %s2065_s14, %s2840_s14   ;;  %s2017_s13 = sphi %s2063_s13, %s2844_s13   ;;  %s2013_s12 = sphi %s2061_s12, %s2843_s12  }
   0xb   : > { %2811 = sst [smem:[#allocation14_spill]] %s2029_s16  ;;  %s1476_s19 = sadd.s32 4294967294, %s2033_s17  }
   0xc   : > { %2812 = sst [smem:[#allocation15_spill]] %s2033_s17  ;;  %s34_s20 = sadd.s32 1, %s2029_s16 }
   0xd   : > { %s43_s21 = sadd.s32 1, %s2021_s14  ;;  %p36_p0 = scmp.ge.s32.totalorder %s34_s20, 2 }
   0xe   : > { %p50_p1 = scmp.ne.s32.totalorder %s2021_s14, %s2017_s13  ;;  %p51_p2 = scmp.eq.s32.totalorder %s2033_s17, 0 }
   0xf   : > { %p56_p3 = scmp.ne.s32.totalorder %s2017_s13, %s2013_s12  ;;  %s2846_s20 = smov (%p36_p0, %s34_s20), 0 }
  0x10   : > { %2813 = sst [smem:[#allocation16_spill]] %s2846_s20  ;;  %p2104_p4 = por %p51_p2, %p50_p1 }
  0x11   : > { %p57_p5 = scmp.eq.s32.totalorder %s2092_s18, 0  ;;  %s38_s23 = ssub.s32 %s2029_s16, %s2846_s20 }
  0x12   : > { %p138_p6 = scmp.eq.s32.totalorder %s2092_s18, 1  ;;  %p41_p7 = scmp.eq.s32.totalorder %s38_s23, 0 }
  0x13   : > { %p2112_p8 = por %p57_p5, %p56_p3  ;;  %p144_p10 = scmp.eq.s32.totalorder %s1476_s19, 1 }
  0x14   : > { %p2116_p9 = por %p138_p6, %p50_p1  ;;  %p1478_p12 = scmp.ge.s32.totalorder %s2033_s17, 2 }
  0x15   : > { %s2121_s26 = scalar_select %p41_p7, %s2021_s14, %s43_s21  }
  0x16   : > { %p2123_p11 = por %p144_p10, %p56_p3  ;;  %p1802_p13 = scmp.lt.s32.totalorder %s2033_s17, 2 }
  0x17   : > { %2817 = sst [smem:[#allocation17_spill]] %s2121_s26  ;;  %s164_s28 = sand.u32 1, %s2021_s14  }
  0x18   : > { %s2130_s29 = sshll.u32 %s164_s28, 6  ;;  %s1674_s30 = sshll.u32 %s2029_s16, 6 }
  0x19   : > { %p2135_p0 = pnand %p1802_p13, %p2104_p4  ;;  %s188_s5 = sand.u32 1, %s2033_s17  }
  0x1a   : > { %s2820_s1 = sld [smem:[#allocation18_spill]]  ;;  %s192_s10 = scalar_lea.vmem [#allocation6], %s2130_s29 }
  0x1b   : > { %s202_s11 = sshll.u32 %s192_s10, 4  ;;  %s189_s19 = scalar_lea.sflag [#allocation7], %s188_s5  ;;  %s203_s11 = int_to_ptr.vmem [resolvable:$true] %s202_s11 }
  0x1c   : > { %s2035_s21 = smov 64   ;;  %s2036_s22 = smov 4  }
  0x1d   : > { %p1488_p1 = scmp.ge.s32.totalorder %s2033_s17, 1  ;;  %p234_p2 = scmp.lt.s32.totalorder %s2033_s17, 3 }
  0x1e   : > { %s165_s5 = scalar_lea.sflag [#allocation4], %s164_s28  ;;  %s223_s16 = scalar_lea.hbm %s2802_s2, %s1674_s30 }
  0x1f   : > { %p2148_p3 = pnand %p1488_p1, %p234_p2  ;;  %s224_s26 = sshll.u32 %s223_s16, 4  ;;  %s225_s26 = int_to_ptr.hbm [resolvable:$true] %s224_s26 }
  0x20   : > { %s199_s8 = scalar_lea.hbm %s2820_s1, %s1674_s30  ;;  %s168_s1 = scalar_lea.vmem [#allocation3], %s2130_s29 }
  0x21   : > { %s200_s9 = sshll.u32 %s199_s8, 4  ;;  %s175_s8 = scalar_lea.hbm %s2800_s0, %s1674_s30  ;;  %s201_s9 = int_to_ptr.hbm [resolvable:$true] %s200_s9 }
  0x22   : > { %1794 = dma.hbm_to_vmem [thread:$0]  (!%p2135_p0), %s201_s9, 1024, %s203_s11, %s189_s19, %s2035_s21, %s2035_s21, %s2036_s22  }
  0x23   : > { %s176_s10 = sshll.u32 %s175_s8, 4  ;;  %s178_s20 = sshll.u32 %s168_s1, 4  ;;  %s177_s10 = int_to_ptr.hbm [resolvable:$true] %s176_s10  ;;  %s179_s20 = int_to_ptr.vmem [resolvable:$true] %s178_s20 }
  0x24   : > { %1791 = dma.hbm_to_vmem [thread:$0]  (!%p2135_p0), %s177_s10, 1024, %s179_s20, %s165_s5, %s2035_s21, %s2035_s21, %s2036_s22  }
  0x25   : > { %s216_s14 = scalar_lea.vmem [#allocation8], %s2130_s29  ;;  %238 = sbr.rel (%p2148_p3) target bundleno = 857 (0x359), region = 32 }
  0x26   : > { %s226_s17 = sshll.u32 %s216_s14, 4  ;;  %s2167_s1 = sand.u32 (!%p2148_p3), 1, %s2017_s13   ;;  %s227_s17 = int_to_ptr.vmem [resolvable:$true] %s226_s17 }
  0x27   : > { %1797 = dma.hbm_to_vmem [thread:$0]  (!%p2135_p0), %s225_s26, 1024, %s227_s17, %s189_s19, %s2035_s21, %s2035_s21, %s2036_s22  }
  0x28   : > { %s2170_s20 = sshll.u32 (!%p2148_p3), %s2167_s1, 6  ;;  %s241_s28 = scalar_lea.sflag (!%p2148_p3), [#allocation4], %s2167_s1 }
  0x29   : > { %s2174_s16 = scalar_lea.vmem (!%p2148_p3), [#allocation3], %s2170_s20 }
  0x2a   : > { %2000 = dma.done.wait (%p2112_p8), %s241_s28, 1024  }
  0x2b   : > { %2002 = vsyncadd (%p2112_p8), %s241_s28, 4294966272  ;;  %s250_s14 = sand.u32 1, %s2092_s18   ;;  %s2182_s26 = scalar_lea.vmem [#allocation6], %s2170_s20 }
  0x2c   : > { %s251_s17 = scalar_lea.sflag [#allocation7], %s250_s14 }
  0x2d   : > { %2004 = dma.done.wait (%p2112_p8), %s251_s17, 2048  }
  0x2e   : > { %2006 = vsyncadd (%p2112_p8), %s251_s17, 4294965248  ;;  %v2189_v0 = vld [vmem:[%s2182_s26 + $0x38] sm:$0xff]  ;;  %v2192_v1 = vld [vmem:[%s2182_s26 + $0x28] sm:$0xff]  ;;  %s2037_s29 = smov 64   ;;  %vm307_vm0 = vcmask 523264   ;;  %v2038_v3 = vmov 0.0  }
  0x2f   : > { %875 = vrot.lane.b32.xlu0 %v2189_v0, %s2037_s29  ;;  %871 = vrot.lane.b32.xlu1 %v2192_v1, %s2037_s29  ;;  %v2199_v2 = vld [vmem:[%s2182_s26 + $0x30] sm:$0xff]  ;;  %314 = vst.msk [vmem:[#allocation2 + $0x30] sm:$0xff] %vm307_vm0, %v2038_v3  ;;  %v2236_v12 = vld [vmem:[%s2182_s26 + $0x20] sm:$0xff]  ;;  %s2265_s18 = scalar_lea.vmem [#allocation8], %s2170_s20  ;;  %v542_v21 = vsel %vm307_vm0, %v2189_v0, 0  ;;  %v536_v32 = vsel %vm307_vm0, %v2192_v1, 0 }
  0x30   : > { %315 = vst.msk [vmem:[#allocation2 + $0x38] sm:$0xff] %vm307_vm0, %v2038_v3  ;;  %v2239_v13 = vld [vmem:[%s2182_s26 + $0x10] sm:$0xff]  ;;  %869 = vrot.lane.b32.xlu2 %v2236_v12, %s2037_s29  ;;  %v2254_v18 = vld [vmem:[%s2182_s26] sm:$0xff]  ;;  %v2268_v20 = vld [vmem:[%s2265_s18 + $0x38] sm:$0xff]  ;;  %544 = vmatpush.bf16.xpose.msra.mxu0 %v542_v21  ;;  %v539_v29 = vsel %vm307_vm0, %v2199_v2, 0  ;;  %v533_v36 = vsel %vm307_vm0, %v2236_v12, 0 }
  0x31   : > { %308 = vst.msk [vmem:[#allocation2] sm:$0xff] %vm307_vm0, %v2038_v3  ;;  %v2257_v19 = vld [vmem:[%s2174_s16] sm:$0xff]  ;;  %v2273_v22 = vld [vmem:[%s2174_s16 + $0x8] sm:$0xff]  ;;  %v1688_v23 = vld [vmem:[%s2182_s26 + $0x18] sm:$0xff]  ;;  %791 = vmatpush.bf16.msra.mxu3 %v2268_v20  ;;  %718 = vmatpush.bf16.msra.mxu2 %v2268_v20  ;;  %v527_v39 = vsel %vm307_vm0, %v2239_v13, 0  ;;  %v521_v44 = vsel %vm307_vm0, %v2254_v18, 0 }
  0x32   : > { %309 = vst.msk [vmem:[#allocation2 + $0x8] sm:$0xff] %vm307_vm0, %v2038_v3  ;;  %v2278_v24 = vld [vmem:[%s2265_s18 + $0x30] sm:$0xff]  ;;  %v2286_v25 = vld [vmem:[%s2265_s18 + $0x28] sm:$0xff]  ;;  %v2292_v27 = vld [vmem:[%s2265_s18 + $0x20] sm:$0xff]  ;;  %v530_v37 = vsel %vm307_vm0, %v1688_v23, 0  ;;  %s2691_s24 = scalar_lea.vmem [#allocation9], %s2170_s20 }
  0x33   : > { %310 = vst.msk [vmem:[#allocation2 + $0x10] sm:$0xff] %vm307_vm0, %v2038_v3  ;;  %v1686_v26 = vld [vmem:[%s2182_s26 + $0x8] sm:$0xff]  ;;  %v2301_v28 = vld [vmem:[%s2265_s18 + $0x18] sm:$0xff]  ;;  %v2307_v30 = vld [vmem:[%s2265_s18 + $0x10] sm:$0xff]  ;;  %s1701_s30 = sshll.u32 %s2025_s15, 6  ;;  %s1336_s22 = sshll.u32 %s2691_s24, 4  ;;  %s1337_s22 = int_to_ptr.vmem [resolvable:$true] %s1336_s22 }
  0x34   : > { %311 = vst.msk [vmem:[#allocation2 + $0x18] sm:$0xff] %vm307_vm0, %v2038_v3  ;;  %v2314_v31 = vld [vmem:[%s2265_s18 + $0x8] sm:$0xff]  ;;  %v2320_v33 = vld [vmem:[%s2174_s16 + $0x10] sm:$0xff]  ;;  %v2327_v34 = vld [vmem:[%s2265_s18] sm:$0xff]  ;;  %v524_v40 = vsel %vm307_vm0, %v1686_v26, 0  ;;  %s1335_s21 = scalar_lea.hbm %s2803_s3, %s1701_s30  ;;  %s1322_s23 = scalar_lea.sflag [#allocation5], %s2167_s1 }
  0x35   : > { %312 = vst.msk [vmem:[#allocation2 + $0x20] sm:$0xff] %vm307_vm0, %v2038_v3  ;;  %792 = vmatpush.bf16.msra.mxu3 %v2278_v24  ;;  %719 = vmatpush.bf16.msra.mxu2 %v2278_v24  ;;  %v2335_v35 = vld [vmem:[%s2174_s16 + $0x18] sm:$0xff]  ;;  %v2345_v38 = vld [vmem:[%s2174_s16 + $0x20] sm:$0xff]  ;;  %v2357_v43 = vld [vmem:[%s2174_s16 + $0x28] sm:$0xff]  ;;  %s1338_s15 = sshll.u32 %s1335_s21, 4  ;;  %s1967_s5 = scalar_lea.hbm %s2803_s3, 128  ;;  %s1339_s15 = int_to_ptr.hbm [resolvable:$true] %s1338_s15 }
  0x36   : > { %v2210_v4 = vld [vmem:[#allocation2 + $0x30] sm:$0xff]  ;;  %313 = vst.msk [vmem:[#allocation2 + $0x28] sm:$0xff] %vm307_vm0, %v2038_v3  ;;  %v2372_v51 = vld [vmem:[%s2174_s16 + $0x38] sm:$0xff]  ;;  %s1961_s6 = sshra.s32 %s1339_s15, 4  ;;  %s1962_s6 = int_to_ptr.hbm [resolvable:$true] %s1961_s6 }
  0x37   : > { %873 = vrot.lane.b32.xlu0 %v2199_v2, %s2037_s29  ;;  %v2213_v5 = vld [vmem:[#allocation2 + $0x38] sm:$0xff]  ;;  %316 = vst.msk [vmem:[#allocation2 + $0x40] sm:$0xff] %vm307_vm0, %v2038_v3  ;;  %v1683_v49 = vld [vmem:[%s2174_s16 + $0x30] sm:$0xff]  ;;  %s1963_s7 = scalar_lea.hbm %s1962_s6, 64  ;;  %p1968_p7 = scmp.lt.s32.totalorder %s1962_s6, %s2803_s3 }
  0x38   : > { %v620_v6 = vpack.c.bf16 %v2213_v5, %v2210_v4  ;;  %317 = vst.msk [vmem:[#allocation2 + $0x48] sm:$0xff] %vm307_vm0, %v2038_v3  ;;  %v2243_v15 = vld [vmem:[#allocation2] sm:$0xff]  ;;  %867 = vrot.lane.b32.xlu2 %v1688_v23, %s2037_s29  ;;  %545 = vmatpush.bf16.xpose.msra.mxu0 %v539_v29  ;;  %p1964_p4 = scmp.ne.s32.totalorder %s1962_s6, %s1963_s7  ;;  %p1969_p8 = scmp.lt.s32.totalorder %s1967_s5, %s1963_s7 }
  0x39   : > { %318 = vst.msk [vmem:[#allocation2 + $0x50] sm:$0xff] %vm307_vm0, %v2038_v3  ;;  %v2245_v16 = vld [vmem:[#allocation2 + $0x8] sm:$0xff]  ;;  %793 = vmatpush.bf16.msra.mxu3 %v2286_v25  ;;  %720 = vmatpush.bf16.msra.mxu2 %v2286_v25 }
  0x3a   : > { %625 = vmatpush.bf16.msra.mxu1 %v620_v6  ;;  %319 = vst.msk [vmem:[#allocation2 + $0x58] sm:$0xff] %vm307_vm0, %v2038_v3  ;;  %v2228_v9 = vld [vmem:[#allocation2 + $0x10] sm:$0xff]  ;;  %v617_v17 = vpack.c.bf16 %v2245_v16, %v2243_v15  ;;  %p1965_p5 = pnand %p1964_p4, %p2116_p9  ;;  %p1970_p10 = por %p1969_p8, %p1968_p7 }
  0x3b   : > { %320 = vst.msk [vmem:[#allocation2 + $0x60] sm:$0xff] %vm307_vm0, %v2038_v3  ;;  %v2230_v10 = vld [vmem:[#allocation2 + $0x18] sm:$0xff] }
  0x3c   : > { %321 = vst.msk [vmem:[#allocation2 + $0x68] sm:$0xff] %vm307_vm0, %v2038_v3  ;;  %v2223_v7 = vld [vmem:[#allocation2 + $0x20] sm:$0xff]  ;;  %v618_v14 = vpack.c.bf16 %v2230_v10, %v2228_v9  ;;  %p1966_p6 = pneg %p1965_p5 }
  0x3d   : > { %322 = vst.msk [vmem:[#allocation2 + $0x70] sm:$0xff] %vm307_vm0, %v2038_v3  ;;  %v2226_v8 = vld [vmem:[#allocation2 + $0x28] sm:$0xff]  ;;  %794 = vmatpush.bf16.msra.mxu3 %v2292_v27  ;;  %721 = vmatpush.bf16.msra.mxu2 %v2292_v27 }
  0x3e   : > { %323 = vst.msk [vmem:[#allocation2 + $0x78] sm:$0xff] %vm307_vm0, %v2038_v3  ;;  %v619_v11 = vpack.c.bf16 %v2226_v8, %v2223_v7  ;;  %v2395_v61 = vld [vmem:[#allocation2 + $0x40] sm:$0xff]  ;;  %p1971_p13 = pnand %p1970_p10, %p1966_p6 }
  0x3f   : > { %865 = vrot.lane.b32.xlu0 %v2239_v13, %s2037_s29  ;;  %v2397_v62 = vld [vmem:[#allocation2 + $0x48] sm:$0xff] }
  0x40   : > { %626 = vmatpush.bf16.msra.mxu1 %v619_v11  ;;  %863 = vrot.lane.b32.xlu2 %v1686_v26, %s2037_s29  ;;  %v2389_v58 = vld [vmem:[#allocation2 + $0x50] sm:$0xff]  ;;  %v998_v63 = vpack.c.bf16 %v2397_v62, %v2395_v61 }
  0x41   : > { %795 = vmatpush.bf16.msra.mxu3 %v2301_v28  ;;  %722 = vmatpush.bf16.msra.mxu2 %v2301_v28  ;;  %v2391_v59 = vld [vmem:[#allocation2 + $0x58] sm:$0xff] }
  0x42   : > { %546 = vmatpush.bf16.xpose.msra.mxu0 %v536_v32  ;;  %v2378_v54 = vld [vmem:[#allocation2 + $0x60] sm:$0xff]  ;;  %v999_v60 = vpack.c.bf16 %v2391_v59, %v2389_v58 }
  0x43   : > { %v2380_v55 = vld [vmem:[#allocation2 + $0x68] sm:$0xff] }
  0x44   : > { %627 = vmatpush.bf16.msra.mxu1 %v618_v14  ;;  %v2374_v52 = vld [vmem:[#allocation2 + $0x70] sm:$0xff]  ;;  %v1000_v57 = vpack.c.bf16 %v2380_v55, %v2378_v54 }
  0x45   : > { %796 = vmatpush.bf16.msra.mxu3 %v2307_v30  ;;  %723 = vmatpush.bf16.msra.mxu2 %v2307_v30  ;;  %v2376_v53 = vld [vmem:[#allocation2 + $0x78] sm:$0xff] }
  0x46   : > { %v1001_v56 = vpack.c.bf16 %v2376_v53, %v2374_v52 }
  0x47   : > { %861 = vrot.lane.b32.xlu0 %v2254_v18, %s2037_s29 }
  0x48   : > { %628 = vmatpush.bf16.msra.mxu1 %v617_v17  ;;  %845 = vrot.lane.b32.xlu2 %v2257_v19, %s2037_s29 }
  0x49   : > { %797 = vmatpush.bf16.msra.mxu3 %v2314_v31  ;;  %724 = vmatpush.bf16.msra.mxu2 %v2314_v31 }
  0x4a   : > { %547 = vmatpush.bf16.xpose.msra.mxu0 %v533_v36 }
  0x4b   : > { %1565 = vmatmul.msk.bf16.vlgmr.msra.gmra.mxu1 %vm307_vm0, %v2257_v19 }
  0x4c   : > { %1006 = vmatpush.bf16.msrb.mxu1 %v1001_v56 }
  0x4d   : > { %798 = vmatpush.bf16.msra.mxu3 %v2327_v34  ;;  %725 = vmatpush.bf16.msra.mxu2 %v2327_v34 }
  0x4f   : > { %847 = vrot.lane.b32.xlu0 %v2273_v22, %s2037_s29 }
  0x50   : > { %849 = vrot.lane.b32.xlu2 %v2320_v33, %s2037_s29  ;;  %1007 = vmatpush.bf16.msrb.mxu1 %v1000_v57 }
  0x52   : > { %548 = vmatpush.bf16.xpose.msra.mxu0 %v530_v37 }
  0x54   : > { %1008 = vmatpush.bf16.msrb.mxu1 %v999_v60 }
  0x57   : > { %851 = vrot.lane.b32.xlu0 %v2335_v35, %s2037_s29 }
  0x58   : > { %853 = vrot.lane.b32.xlu2 %v2345_v38, %s2037_s29  ;;  %1009 = vmatpush.bf16.msrb.mxu1 %v998_v63 }
  0x5a   : > { %549 = vmatpush.bf16.xpose.msra.mxu0 %v527_v39 }
  0x5b   : > { %1566 = vmatmul.msk.bf16.gmra.mxu1 %vm307_vm0, %v2273_v22 }
  0x5f   : > { %855 = vrot.lane.b32.xlu0 %v2357_v43, %s2037_s29 }
  0x60   : > { %857 = vrot.lane.b32.xlu2 %v1683_v49, %s2037_s29 }
  0x62   : > { %550 = vmatpush.bf16.xpose.msra.mxu0 %v524_v40 }
  0x64   : > { %775 = vxpose.xlu1.c.b16.start [1/8] (narrow) %v2254_v18, 64 }
  0x67   : > { %859 = vrot.lane.b32.xlu0 %v2372_v51, %s2037_s29 }
  0x68   : > { %1065 = vrot.lane.b32.xlu2 %v2268_v20, %s2037_s29 }
  0x6b   : > { %1567 = vmatmul.msk.bf16.gmra.mxu1 %vm307_vm0, %v2320_v33 }
  0x6f   : > { %1063 = vrot.lane.b32.xlu0 %v2278_v24, %s2037_s29 }
  0x70   : > { %1061 = vrot.lane.b32.xlu2 %v2286_v25, %s2037_s29 }
  0x74   : > { %776 = vxpose.xlu1.c.b16.cont [2/8] (narrow) %v1686_v26, 64 }
  0x77   : > { %1059 = vrot.lane.b32.xlu0 %v2292_v27, %s2037_s29 }
  0x78   : > { %1057 = vrot.lane.b32.xlu2 %v2301_v28, %s2037_s29 }
  0x7b   : > { %1568 = vmatmul.msk.bf16.gmra.mxu1 %vm307_vm0, %v2335_v35 }
  0x7f   : > { %1055 = vrot.lane.b32.xlu0 %v2307_v30, %s2037_s29  ;;  %v324_v30 = vlaneseq }
  0x80   : > { %1053 = vrot.lane.b32.xlu2 %v2314_v31, %s2037_s29 }
  0x81   : > { %v2472_v32 = vshrl.u32 %v324_v30, 7 }
  0x83   : > { %v329_v60 = vadd.s32 32, %v2472_v32  ;;  %v330_v63 = vadd.s32 40, %v2472_v32 }
  0x84   : > { %777 = vxpose.xlu1.c.b16.cont [3/8] (narrow) %v2239_v13, 64 }
  0x87   : > { %1051 = vrot.lane.b32.xlu0 %v2327_v34, %s2037_s29 }
  0x8a   : > { %v870_v50 = vpop.permute.xlu2 %869 }
  0x8b   : > { %1569 = vmatmul.msk.bf16.gmra.mxu1 %vm307_vm0, %v2345_v38  ;;  %v914_v13 = vsel %vm307_vm0, %v870_v50, 0 }
  0x94   : > { %778 = vxpose.xlu1.c.b16.cont [4/8] (narrow) %v1688_v23, 64 }
  0x9b   : > { %1570 = vmatmul.msk.bf16.gmra.mxu1 %vm307_vm0, %v2357_v43 }
  0xa1   : > { %v876_v41 = vpop.permute.xlu0 %875  ;;  %v872_v47 = vpop.permute.xlu1 %871 }
  0xa2   : > { %v923_v42 = vsel %vm307_vm0, %v876_v41, 0  ;;  %1760 = vmatpush.lsf.bf16.msrb.mxu0 %v876_v41  ;;  %v917_v48 = vsel %vm307_vm0, %v872_v47, 0 }
  0xa3   : > { %925 = vmatpush.bf16.xpose.msrb.mxu3 %v923_v42 }
  0xa4   : > { %779 = vxpose.xlu1.c.b16.cont [5/8] (narrow) %v2236_v12, 64 }
  0xa6   : > { %551 = vmatpush.bf16.xpose.msra.mxu0 %v521_v44  ;;  %v327_v44 = vadd.s32 16, %v2472_v32 }
  0xa9   : > { %v874_v45 = vpop.permute.xlu0 %873 }
  0xaa   : > { %v920_v46 = vsel %vm307_vm0, %v874_v45, 0 }
  0xab   : > { %926 = vmatpush.bf16.xpose.msrb.mxu3 %v920_v46  ;;  %1571 = vmatmul.msk.bf16.gmra.mxu1 %vm307_vm0, %v1683_v49 }
  0xad   : > { %1557 = vmatmul.msk.bf16.vlgmr.msra.gmra.mxu0 %vm307_vm0, %v2257_v19 }
  0xae   : > { %1761 = vmatpush.lsf.bf16.msrb.mxu0 %v874_v45  ;;  %v328_v45 = vadd.s32 24, %v2472_v32 }
  0xb1   : > { %v866_v3 = vpop.permute.xlu0 %865 }
  0xb2   : > { %1762 = vmatpush.lsf.bf16.msrb.mxu0 %v872_v47  ;;  %v908_v20 = vsel %vm307_vm0, %v866_v3, 0 }
  0xb3   : > { %927 = vmatpush.bf16.xpose.msrb.mxu3 %v917_v48 }
  0xb4   : > { %780 = vxpose.xlu1.c.b16.cont [6/8] (narrow) %v2192_v1, 64  ;;  %v868_v1 = vpop.permute.xlu2 %867 }
  0xb5   : > { %v911_v14 = vsel %vm307_vm0, %v868_v1, 0 }
  0xb6   : > { %1763 = vmatpush.lsf.bf16.msrb.mxu0 %v870_v50 }
  0xba   : > { %1764 = vmatpush.lsf.bf16.msrb.mxu0 %v868_v1 }
  0xbb   : > { %1572 = vmatmul.msk.bf16.gmra.mxu1 %vm307_vm0, %v2372_v51  ;;  %928 = vmatpush.bf16.xpose.msrb.mxu3 %v914_v13  ;;  %v331_v13 = vadd.s32 48, %v2472_v32 }
  0xbc   : > { %v864_v6 = vpop.permute.xlu2 %863 }
  0xbd   : > { %1558 = vmatmul.msk.bf16.gmra.mxu0 %vm307_vm0, %v2273_v22  ;;  %v905_v22 = vsel %vm307_vm0, %v864_v6, 0 }
  0xbe   : > { %1765 = vmatpush.lsf.bf16.msrb.mxu0 %v866_v3 }
  0xc2   : > { %1766 = vmatpush.lsf.bf16.msrb.mxu0 %v864_v6 }
  0xc3   : > { %929 = vmatpush.bf16.xpose.msrb.mxu3 %v911_v14  ;;  %v332_v14 = vadd.s32 56, %v2472_v32 }
  0xc4   : > { %781 = vxpose.xlu1.c.b16.cont [7/8] (narrow) %v2199_v2, 64  ;;  %v862_v2 = vpop.permute.xlu0 %861  ;;  %v2426_v11 = vpop.permute.xlu2 %845 }
  0xc5   : > { %v902_v26 = vsel %vm307_vm0, %v862_v2, 0 }
  0xc6   : > { %1767 = vmatpush.lsf.bf16.msrb.mxu0 %v862_v2 }
  0xc8   : > { %v2446_v17 = vpop.f32.mrf.mxu1 }
  0xcb   : > { %1637 = vmatmul.msk.bf16.vlgmr.msrb.gmra.mxu1 %vm307_vm0, %v2426_v11  ;;  %930 = vmatpush.bf16.xpose.msrb.mxu3 %v908_v20 }
  0xcc   : > { %v2432_v12 = vpop.permute.xlu0 %847 }
  0xcd   : > { %1559 = vmatmul.msk.bf16.gmra.mxu0 %vm307_vm0, %v2320_v33  ;;  %v2474_v33 = vand.u32 127, %v324_v30 }
  0xcf   : > { %vm343_vm1 = vcmp.ge.s32.totalorder %v2472_v32, %v2474_v33  ;;  %vm345_vm4 = vcmp.ge.s32.totalorder %v327_v44, %v2474_v33  ;;  %vm346_vm5 = vcmp.ge.s32.totalorder %v328_v45, %v2474_v33  ;;  %vm347_vm7 = vcmp.ge.s32.totalorder %v329_v60, %v2474_v33 }
  0xd0   : > { %v2454_v21 = vpop.f32.mrf.mxu1  ;;  %vm2498_vm6 = vmpackc.low %vm346_vm5, %vm345_vm4  ;;  %vm348_vm8 = vcmp.ge.s32.totalorder %v330_v63, %v2474_v33  ;;  %vm349_vm10 = vcmp.ge.s32.totalorder %v331_v13, %v2474_v33  ;;  %vm350_vm11 = vcmp.ge.s32.totalorder %v332_v14, %v2474_v33  ;;  %v337_v45 = vadd.s32 96, %v2472_v32 }
  0xd1   : > { %vm2518_vm9 = vmpackc.low %vm348_vm8, %vm347_vm7 }
  0xd2   : > { %vm2530_vm12 = vmpackc.low %vm350_vm11, %vm349_vm10  ;;  %vm355_vm5 = vcmp.ge.s32.totalorder %v337_v45, %v2474_v33 }
  0xd3   : > { %931 = vmatpush.bf16.xpose.msrb.mxu3 %v905_v22 }
  0xd4   : > { %782 = vxpose.xlu1.c.b16.end [8/8] (narrow) %v2189_v0, 64  ;;  %v2438_v0 = vpop.permute.xlu2 %849  ;;  %v2448_v18 = vpop.permute.xlu0 %851 }
  0xd8   : > { %v2459_v24 = vpop.f32.mrf.mxu1 }
  0xdb   : > { %1638 = vmatmul.msk.bf16.gmra.mxu1 %vm307_vm0, %v2432_v12  ;;  %932 = vmatpush.bf16.xpose.msrb.mxu3 %v902_v26  ;;  %v334_v26 = vadd.s32 72, %v2472_v32 }
  0xdc   : > { %1768 = vllmr.8.mxu0  ;;  %v2457_v23 = vpop.permute.xlu2 %853  ;;  %v2468_v29 = vpop.permute.xlu0 %855 }
  0xdd   : > { %1560 = vmatmul.msk.bf16.gmra.mxu0 %vm307_vm0, %v2335_v35  ;;  %v326_v35 = vadd.s32 8, %v2472_v32  ;;  %vm352_vm14 = vcmp.ge.s32.totalorder %v334_v26, %v2474_v33 }
  0xdf   : > { %vm344_vm2 = vcmp.ge.s32.totalorder %v326_v35, %v2474_v33 }
  0xe0   : > { %v2466_v27 = vpop.f32.mrf.mxu1  ;;  %vm2482_vm3 = vmpackc.low %vm344_vm2, %vm343_vm1 }
  0xe4   : > { %v2488_v39 = vpop.permute.xlu2 %857  ;;  %v2506_v50 = vpop.permute.xlu0 %859 }
  0xe8   : > { %v2476_v34 = vpop.f32.mrf.mxu1 }
  0xeb   : > { %1639 = vmatmul.msk.bf16.gmra.mxu1 %vm307_vm0, %v2438_v0 }
  0xec   : > { %v1064_v57 = vpop.permute.xlu0 %1063 }
  0xed   : > { %1561 = vmatmul.msk.bf16.gmra.mxu0 %vm307_vm0, %v2345_v38 }
  0xf0   : > { %v2490_v41 = vpop.f32.mrf.mxu1 }
  0xf4   : > { %v1060_v35 = vpop.permute.xlu0 %1059 }
  0xfb   : > { %1640 = vmatmul.msk.bf16.gmra.mxu1 %vm307_vm0, %v2448_v18 }
  0xfd   : > { %1562 = vmatmul.msk.bf16.gmra.mxu0 %vm307_vm0, %v2357_v43  ;;  %v1066_v43 = vpop.permute.xlu2 %1065 }
  0xfe   : > { %1075 = vmatpush.bf16.msrb.mxu2 %v1066_v43  ;;  %1148 = vmatpush.bf16.msra.mxu0 %v1066_v43 }
 0x102   : > { %1076 = vmatpush.bf16.msrb.mxu2 %v1064_v57  ;;  %1149 = vmatpush.bf16.msra.mxu0 %v1064_v57 }
 0x10b   : > { %1641 = vmatmul.msk.bf16.gmra.mxu1 %vm307_vm0, %v2457_v23 }
 0x10d   : > { %1563 = vmatmul.msk.bf16.gmra.mxu0 %vm307_vm0, %v1683_v49  ;;  %v2502_v49 = vpop.f32.mrf.mxu1 }
 0x110   : > { %v783_v19 = vpop.trf.xlu1 }
 0x111   : > { %799 = vmatmul.bf16.vlgmr.msra.gmra.mxu3 %v783_v19 }
 0x112   : > { %1749 = vmatpush.bf16.msra.mxu3 %v1066_v43 }
 0x115   : > { %v2508_v56 = vpop.f32.mrf.mxu1 }
 0x116   : > { %1750 = vmatpush.bf16.msra.mxu3 %v1064_v57 }
 0x11b   : > { %1642 = vmatmul.msk.bf16.gmra.mxu1 %vm307_vm0, %v2468_v29 }
 0x11d   : > { %1564 = vmatmul.msk.bf16.gmra.mxu0 %vm307_vm0, %v2372_v51 }
 0x120   : > { %v784_v25 = vpop.trf.xlu1 }
 0x121   : > { %804 = vmatmul.bf16.gmra.mxu3 %v784_v25  ;;  %v333_v25 = vadd.s32 64, %v2472_v32 }
 0x123   : > { %vm351_vm13 = vcmp.ge.s32.totalorder %v333_v25, %v2474_v33 }
 0x124   : > { %vm2542_vm15 = vmpackc.low %vm352_vm14, %vm351_vm13 }
 0x12a   : > { %v553_v28 = vpop.f32.mrf.mxu0 }
 0x12b   : > { %1643 = vmatmul.msk.bf16.gmra.mxu1 %vm307_vm0, %v2488_v39 }
 0x130   : > { %v785_v31 = vpop.trf.xlu1 }
 0x131   : > { %809 = vmatmul.bf16.gmra.mxu3 %v785_v31 }
 0x132   : > { %v555_v36 = vpop.f32.mrf.mxu0 }
 0x133   : > { %v1606_v37 = vpack.c.bf16 %v555_v36, %v553_v28  ;;  %v335_v36 = vadd.s32 80, %v2472_v32 }
 0x135   : > { %1607 = vmatmul.msk.bf16.vlgmr.msra.gmra.mxu2 %vm2482_vm3, %v1606_v37  ;;  %v336_v37 = vadd.s32 88, %v2472_v32  ;;  %vm353_vm1 = vcmp.ge.s32.totalorder %v335_v36, %v2474_v33 }
 0x137   : > { %vm354_vm2 = vcmp.ge.s32.totalorder %v336_v37, %v2474_v33 }
 0x138   : > { %vm2554_vm4 = vmpackc.low %vm354_vm2, %vm353_vm1 }
 0x13a   : > { %v558_v40 = vpop.f32.mrf.mxu0 }
 0x13b   : > { %1644 = vmatmul.msk.bf16.gmra.mxu1 %vm307_vm0, %v2506_v50 }
 0x140   : > { %v786_v42 = vpop.trf.xlu1 }
 0x141   : > { %814 = vmatmul.bf16.gmra.mxu3 %v786_v42 }
 0x142   : > { %v560_v46 = vpop.f32.mrf.mxu0 }
 0x143   : > { %v1609_v48 = vpack.c.bf16 %v560_v46, %v558_v40  ;;  %v338_v46 = vadd.s32 104, %v2472_v32 }
 0x145   : > { %1610 = vmatmul.msk.bf16.gmra.mxu2 %vm2498_vm6, %v1609_v48  ;;  %vm356_vm7 = vcmp.ge.s32.totalorder %v338_v46, %v2474_v33 }
 0x146   : > { %vm2567_vm8 = vmpackc.low %vm356_vm7, %vm355_vm5 }
 0x14a   : > { %v563_v51 = vpop.f32.mrf.mxu0 }
 0x151   : > { %1629 = vmatmul.msk.bf16.vlgmr.msrb.gmra.mxu3 %vm307_vm0, %v2426_v11  ;;  %v1062_v11 = vpop.permute.xlu2 %1061 }
 0x152   : > { %v565_v1 = vpop.f32.mrf.mxu0  ;;  %1077 = vmatpush.bf16.msrb.mxu2 %v1062_v11  ;;  %1751 = vmatpush.bf16.msra.mxu3 %v1062_v11 }
 0x153   : > { %v1612_v6 = vpack.c.bf16 %v565_v1, %v563_v51  ;;  %1150 = vmatpush.bf16.msra.mxu0 %v1062_v11  ;;  %v340_v11 = vadd.s32 120, %v2472_v32 }
 0x155   : > { %1613 = vmatmul.msk.bf16.gmra.mxu2 %vm2518_vm9, %v1612_v6  ;;  %vm358_vm11 = vcmp.ge.s32.totalorder %v340_v11, %v2474_v33 }
 0x156   : > { %1078 = vmatpush.bf16.msrb.mxu2 %v1060_v35  ;;  %1752 = vmatpush.bf16.msra.mxu3 %v1060_v35 }
 0x157   : > { %1151 = vmatpush.bf16.msra.mxu0 %v1060_v35 }
 0x159   : > { %v1058_v44 = vpop.permute.xlu2 %1057 }
 0x15a   : > { %v568_v2 = vpop.f32.mrf.mxu0  ;;  %1079 = vmatpush.bf16.msrb.mxu2 %v1058_v44  ;;  %1753 = vmatpush.bf16.msra.mxu3 %v1058_v44 }
 0x15b   : > { %1152 = vmatpush.bf16.msra.mxu0 %v1058_v44 }
 0x161   : > { %1630 = vmatmul.msk.bf16.gmra.mxu3 %vm307_vm0, %v2432_v12 }
 0x162   : > { %v570_v19 = vpop.f32.mrf.mxu0 }
 0x163   : > { %v1615_v22 = vpack.c.bf16 %v570_v19, %v568_v2  ;;  %v339_v2 = vadd.s32 112, %v2472_v32 }
 0x165   : > { %1616 = vmatmul.msk.bf16.gmra.mxu2 %vm2530_vm12, %v1615_v22  ;;  %vm357_vm10 = vcmp.ge.s32.totalorder %v339_v2, %v2474_v33 }
 0x166   : > { %vm2583_vm13 = vmpackc.low %vm358_vm11, %vm357_vm10 }
 0x16a   : > { %v573_v12 = vpop.f32.mrf.mxu0 }
 0x171   : > { %1631 = vmatmul.msk.bf16.gmra.mxu3 %vm307_vm0, %v2438_v0 }
 0x172   : > { %v575_v28 = vpop.f32.mrf.mxu0 }
 0x173   : > { %v1618_v30 = vpack.c.bf16 %v575_v28, %v573_v12 }
 0x175   : > { %1619 = vmatmul.msk.bf16.gmra.mxu2 %vm2542_vm15, %v1618_v30 }
 0x17a   : > { %v578_v0 = vpop.f32.mrf.mxu0 }
 0x181   : > { %1632 = vmatmul.msk.bf16.gmra.mxu3 %vm307_vm0, %v2448_v18 }
 0x182   : > { %v580_v40 = vpop.f32.mrf.mxu0 }
 0x183   : > { %v1621_v42 = vpack.c.bf16 %v580_v40, %v578_v0 }
 0x185   : > { %1622 = vmatmul.msk.bf16.gmra.mxu2 %vm2554_vm4, %v1621_v42 }
 0x18a   : > { %v583_v18 = vpop.f32.mrf.mxu0 }
 0x191   : > { %1633 = vmatmul.msk.bf16.gmra.mxu3 %vm307_vm0, %v2457_v23  ;;  %v1056_v23 = vpop.permute.xlu0 %1055 }
 0x192   : > { %v585_v51 = vpop.f32.mrf.mxu0  ;;  %1080 = vmatpush.bf16.msrb.mxu2 %v1056_v23  ;;  %1754 = vmatpush.bf16.msra.mxu3 %v1056_v23 }
 0x193   : > { %v1624_v60 = vpack.c.bf16 %v585_v51, %v583_v18  ;;  %1153 = vmatpush.bf16.msra.mxu0 %v1056_v23  ;;  %v2618_v18 = vpop.f32.mrf.mxu1 }
 0x194   : > { %v800_v48 = vpop.f32.mrf.mxu3 }
 0x195   : > { %v820_v57 = vadd.f32 %v800_v48, %v2243_v15  ;;  %1625 = vmatmul.msk.bf16.gmra.mxu2 %vm2567_vm8, %v1624_v60 }
 0x197   : > { %828 = vst.msk [vmem:[#allocation2] sm:$0xff] %vm307_vm0, %v820_v57 }
 0x199   : > { %v1052_v12 = vpop.permute.xlu0 %1051 }
 0x19a   : > { %v588_v15 = vpop.f32.mrf.mxu0 }
 0x19b   : > { %v2622_v51 = vpop.f32.mrf.mxu1 }
 0x19c   : > { %v802_v1 = vpop.f32.mrf.mxu3 }
 0x19d   : > { %v821_v6 = vadd.f32 %v802_v1, %v2245_v16 }
 0x19f   : > { %829 = vst.msk [vmem:[#allocation2 + $0x8] sm:$0xff] %vm307_vm0, %v821_v6 }
 0x1a1   : > { %1634 = vmatmul.msk.bf16.gmra.mxu3 %vm307_vm0, %v2468_v29  ;;  %v1054_v29 = vpop.permute.xlu2 %1053 }
 0x1a2   : > { %v590_v14 = vpop.f32.mrf.mxu0  ;;  %1081 = vmatpush.bf16.msrb.mxu2 %v1054_v29  ;;  %1755 = vmatpush.bf16.msra.mxu3 %v1054_v29 }
 0x1a3   : > { %v1627_v22 = vpack.c.bf16 %v590_v14, %v588_v15  ;;  %1154 = vmatpush.bf16.msra.mxu0 %v1054_v29  ;;  %v2628_v23 = vpop.f32.mrf.mxu1 }
 0x1a4   : > { %v805_v13 = vpop.f32.mrf.mxu3 }
 0x1a5   : > { %v822_v19 = vadd.f32 %v805_v13, %v2228_v9  ;;  %1628 = vmatmul.msk.bf16.gmra.mxu2 %vm2583_vm13, %v1627_v22 }
 0x1a6   : > { %1082 = vmatpush.bf16.msrb.mxu2 %v1052_v12  ;;  %1756 = vmatpush.bf16.msra.mxu3 %v1052_v12 }
 0x1a7   : > { %830 = vst.msk [vmem:[#allocation2 + $0x10] sm:$0xff] %vm307_vm0, %v822_v19  ;;  %1155 = vmatpush.bf16.msra.mxu0 %v1052_v12 }
 0x1aa   : > { %1769 = vmatmul.lmr.bf16.vlgmr.msra.gmra.8.mxu0 }
 0x1ab   : > { %v2634_v6 = vpop.f32.mrf.mxu1 }
 0x1ac   : > { %v807_v32 = vpop.f32.mrf.mxu3 }
 0x1ad   : > { %v823_v9 = vadd.f32 %v807_v32, %v2230_v10 }
 0x1af   : > { %831 = vst.msk [vmem:[#allocation2 + $0x18] sm:$0xff] %vm307_vm0, %v823_v9 }
 0x1b1   : > { %1635 = vmatmul.msk.bf16.gmra.mxu3 %vm307_vm0, %v2488_v39 }
 0x1b2   : > { %1770 = vmatmul.lmr.bf16.gmra.8.mxu0 }
 0x1b3   : > { %v2638_v13 = vpop.f32.mrf.mxu1 }
 0x1b4   : > { %v810_v33 = vpop.f32.mrf.mxu3 }
 0x1b5   : > { %v824_v25 = vadd.f32 %v810_v33, %v2223_v7 }
 0x1b7   : > { %832 = vst.msk [vmem:[#allocation2 + $0x20] sm:$0xff] %vm307_vm0, %v824_v25 }
 0x1b8   : > { %v2600_v39 = vpop.f32.mrf.mxu2 }
 0x1ba   : > { %1771 = vmatmul.lmr.bf16.gmra.8.mxu0 }
 0x1bb   : > { %v2644_v29 = vpop.f32.mrf.mxu1 }
 0x1bc   : > { %v812_v26 = vpop.f32.mrf.mxu3 }
 0x1bd   : > { %v825_v28 = vadd.f32 %v812_v26, %v2226_v8 }
 0x1bf   : > { %833 = vst.msk [vmem:[#allocation2 + $0x28] sm:$0xff] %vm307_vm0, %v825_v28 }
 0x1c0   : > { %v2605_v0 = vpop.f32.mrf.mxu2 }
 0x1c1   : > { %1636 = vmatmul.msk.bf16.gmra.mxu3 %vm307_vm0, %v2506_v50 }
 0x1c2   : > { %1772 = vmatmul.lmr.bf16.gmra.8.mxu0 }
 0x1c3   : > { %v2650_v33 = vpop.f32.mrf.mxu1 }
 0x1c4   : > { %v815_v10 = vpop.f32.mrf.mxu3 }
 0x1c5   : > { %v826_v7 = vadd.f32 %v815_v10, %v2210_v4 }
 0x1c7   : > { %834 = vst.msk [vmem:[#allocation2 + $0x30] sm:$0xff] %vm307_vm0, %v826_v7 }
 0x1c8   : > { %v2608_v36 = vpop.f32.mrf.mxu2 }
 0x1ca   : > { %1773 = vmatmul.lmr.bf16.gmra.8.mxu0 }
 0x1cb   : > { %v2654_v26 = vpop.f32.mrf.mxu1 }
 0x1cc   : > { %v817_v30 = vpop.f32.mrf.mxu3 }
 0x1cd   : > { %v827_v35 = vadd.f32 %v817_v30, %v2213_v5 }
 0x1cf   : > { %835 = vst.msk [vmem:[#allocation2 + $0x38] sm:$0xff] %vm307_vm0, %v827_v35 }
 0x1d0   : > { %v2612_v4 = vpop.f32.mrf.mxu2 }
 0x1d2   : > { %1774 = vmatmul.lmr.bf16.gmra.8.mxu0 }
 0x1d3   : > { %v1011_v7 = vpop.f32.mrf.mxu1 }
 0x1d4   : > { %v934_v8 = vpop.f32.mrf.mxu3 }
 0x1d8   : > { %v2614_v42 = vpop.f32.mrf.mxu2 }
 0x1da   : > { %1775 = vmatmul.lmr.bf16.gmra.8.mxu0 }
 0x1dc   : > { %v936_v50 = vpop.f32.mrf.mxu3 }
 0x1dd   : > { %v1646_v37 = vpack.c.bf16 %v936_v50, %v934_v8  ;;  %v1013_v50 = vpop.f32.mrf.mxu1 }
 0x1df   : > { %1647 = vmatmul.msk.bf16.vlgmr.msrb.gmra.mxu2 %vm2482_vm3, %v1646_v37 }
 0x1e0   : > { %v2620_v46 = vpop.f32.mrf.mxu2 }
 0x1e2   : > { %1776 = vmatmul.lmr.bf16.gmra.8.mxu0 }
 0x1e4   : > { %v939_v40 = vpop.f32.mrf.mxu3 }
 0x1e8   : > { %v2626_v57 = vpop.f32.mrf.mxu2 }
 0x1ec   : > { %v941_v5 = vpop.f32.mrf.mxu3 }
 0x1ed   : > { %v1649_v44 = vpack.c.bf16 %v941_v5, %v939_v40  ;;  %v1016_v40 = vpop.f32.mrf.mxu1 }
 0x1ef   : > { %1650 = vmatmul.msk.bf16.gmra.mxu2 %vm2498_vm6, %v1649_v44 }
 0x1f0   : > { %v2630_v47 = vpop.f32.mrf.mxu2 }
 0x1f4   : > { %v944_v45 = vpop.f32.mrf.mxu3 }
 0x1f5   : > { %v1018_v44 = vpop.f32.mrf.mxu1 }
 0x1f8   : > { %v2636_v11 = vpop.f32.mrf.mxu2 }
 0x1fc   : > { %v946_v38 = vpop.f32.mrf.mxu3 }
 0x1fd   : > { %v1652_v48 = vpack.c.bf16 %v946_v38, %v944_v45 }
 0x1ff   : > { %1653 = vmatmul.msk.bf16.gmra.mxu2 %vm2518_vm9, %v1652_v48 }
 0x200   : > { %v2640_v19 = vpop.f32.mrf.mxu2 }
 0x204   : > { %v949_v60 = vpop.f32.mrf.mxu3 }
 0x208   : > { %v2646_v32 = vpop.f32.mrf.mxu2 }
 0x20c   : > { %v951_v1 = vpop.f32.mrf.mxu3 }
 0x20d   : > { %v1655_v15 = vpack.c.bf16 %v951_v1, %v949_v60  ;;  %v1021_v60 = vpop.f32.mrf.mxu1 }
 0x20f   : > { %1656 = vmatmul.msk.bf16.gmra.mxu2 %vm2530_vm12, %v1655_v15 }
 0x210   : > { %v2652_v12 = vpop.f32.mrf.mxu2 }
 0x214   : > { %v954_v2 = vpop.f32.mrf.mxu3 }
 0x215   : > { %v1023_v16 = vpop.f32.mrf.mxu1 }
 0x218   : > { %v2656_v28 = vpop.f32.mrf.mxu2 }
 0x21c   : > { %v956_v3 = vpop.f32.mrf.mxu3 }
 0x21d   : > { %v1658_v14 = vpack.c.bf16 %v956_v3, %v954_v2 }
 0x21f   : > { %1659 = vmatmul.msk.bf16.gmra.mxu2 %vm2542_vm15, %v1658_v14  ;;  %v1026_v14 = vpop.f32.mrf.mxu1 }
 0x220   : > { %v2660_v35 = vpop.f32.mrf.mxu2 }
 0x224   : > { %v959_v22 = vpop.f32.mrf.mxu3 }
 0x228   : > { %v2664_v37 = vpop.f32.mrf.mxu2 }
 0x22c   : > { %v961_v20 = vpop.f32.mrf.mxu3 }
 0x22d   : > { %v1661_v9 = vpack.c.bf16 %v961_v20, %v959_v22 }
 0x22f   : > { %1662 = vmatmul.msk.bf16.gmra.mxu2 %vm2554_vm4, %v1661_v9  ;;  %v1028_v9 = vpop.f32.mrf.mxu1 }
 0x230   : > { %v2666_v5 = vpop.f32.mrf.mxu2 }
 0x234   : > { %v964_v25 = vpop.f32.mrf.mxu3 }
 0x23c   : > { %v966_v31 = vpop.f32.mrf.mxu3 }
 0x23d   : > { %v1664_v10 = vpack.c.bf16 %v966_v31, %v964_v25 }
 0x23f   : > { %1665 = vmatmul.msk.bf16.gmra.mxu2 %vm2567_vm8, %v1664_v10 }
 0x244   : > { %v969_v30 = vpop.f32.mrf.mxu3 }
 0x24c   : > { %v971_v43 = vpop.f32.mrf.mxu3 }
 0x24d   : > { %v1667_v8 = vpack.c.bf16 %v971_v43, %v969_v30  ;;  %v1031_v30 = vpop.f32.mrf.mxu1 }
 0x24f   : > { %1668 = vmatmul.msk.bf16.vlgmr.msra.gmra.mxu3 %vm2583_vm13, %v1667_v8 }
 0x262   : > { %v1084_v45 = vpop.f32.mrf.mxu2 }
 0x263   : > { %v1085_v38 = vadd.f32 %v1084_v45, %v1011_v7 }
 0x265   : > { %1209 = vrot.lane.b32.xlu2 %v1085_v38, %s2037_s29 }
 0x26a   : > { %v1086_v63 = vpop.f32.mrf.mxu2 }
 0x26b   : > { %v1087_v48 = vadd.f32 %v1086_v63, %v1013_v50  ;;  %v1033_v50 = vpop.f32.mrf.mxu1 }
 0x26d   : > { %1211 = vrot.lane.b32.xlu0 %v1087_v48, %s2037_s29 }
 0x272   : > { %v1089_v1 = vpop.f32.mrf.mxu2 }
 0x273   : > { %v1090_v15 = vadd.f32 %v1089_v1, %v1016_v40  ;;  %v1036_v45 = vpop.f32.mrf.mxu1 }
 0x275   : > { %1213 = vrot.lane.b32.xlu2 %v1090_v15, %s2037_s29 }
 0x27a   : > { %v1091_v2 = vpop.f32.mrf.mxu2 }
 0x27b   : > { %v1092_v3 = vadd.f32 %v1091_v2, %v1018_v44  ;;  %v1038_v48 = vpop.f32.mrf.mxu1 }
 0x27d   : > { %1215 = vrot.lane.b32.xlu0 %v1092_v3, %s2037_s29 }
 0x282   : > { %v1094_v22 = vpop.f32.mrf.mxu2 }
 0x283   : > { %v1095_v20 = vadd.f32 %v1094_v22, %v1021_v60  ;;  %v1041_v2 = vpop.f32.mrf.mxu1 }
 0x285   : > { %1217 = vrot.lane.b32.xlu2 %v1095_v20, %s2037_s29 }
 0x28a   : > { %v1096_v25 = vpop.f32.mrf.mxu2 }
 0x28b   : > { %v1097_v31 = vadd.f32 %v1096_v25, %v1023_v16  ;;  %v1043_v22 = vpop.f32.mrf.mxu1 }
 0x28d   : > { %1219 = vrot.lane.b32.xlu0 %v1097_v31, %s2037_s29 }
 0x292   : > { %v1099_v10 = vpop.f32.mrf.mxu2 }
 0x293   : > { %v1100_v7 = vadd.f32 %v1099_v10, %v1026_v14  ;;  %v1046_v25 = vpop.f32.mrf.mxu1 }
 0x295   : > { %1221 = vrot.lane.b32.xlu2 %v1100_v7, %s2037_s29 }
 0x29a   : > { %v1101_v43 = vpop.f32.mrf.mxu2 }
 0x29b   : > { %v1102_v8 = vadd.f32 %v1101_v43, %v1028_v9  ;;  %v1048_v7 = vpop.f32.mrf.mxu1 }
 0x29d   : > { %1223 = vrot.lane.b32.xlu0 %v1102_v8, %s2037_s29 }
 0x2a2   : > { %v1104_v40 = vpop.f32.mrf.mxu2 }
 0x2a3   : > { %v1105_v44 = vadd.f32 %v1104_v40, %v1031_v30  ;;  %v730_v40 = vadd.f32 %v2605_v0, %v2454_v21  ;;  %v735_v21 = vadd.f32 %v2612_v4, %v2466_v27  ;;  %v740_v27 = vadd.f32 %v2620_v46, %v2490_v41 }
 0x2a4   : > { %v743_v41 = vadd.f32 %v2626_v57, %v2502_v49  ;;  %v745_v46 = vadd.f32 %v2630_v47, %v2508_v56  ;;  %v748_v56 = vadd.f32 %v2636_v11, %v2618_v18  ;;  %v750_v47 = vadd.f32 %v2640_v19, %v2622_v51 }
 0x2a5   : > { %1225 = vrot.lane.b32.xlu2 %v1105_v44, %s2037_s29  ;;  %v753_v51 = vadd.f32 %v2646_v32, %v2628_v23  ;;  %v755_v19 = vadd.f32 %v2652_v12, %v2634_v6  ;;  %v758_v6 = vadd.f32 %v2656_v28, %v2638_v13  ;;  %v760_v32 = vadd.f32 %v2660_v35, %v2644_v29 }
 0x2a6   : > { %v763_v13 = vadd.f32 %v2664_v37, %v2650_v33  ;;  %v765_v29 = vadd.f32 %v2666_v5, %v2654_v26 }
 0x2aa   : > { %v1106_v38 = vpop.f32.mrf.mxu2 }
 0x2ab   : > { %v1107_v63 = vadd.f32 %v1106_v38, %v1033_v50  ;;  %v728_v50 = vadd.f32 %v2600_v39, %v2446_v17  ;;  %v733_v17 = vadd.f32 %v2608_v36, %v2459_v24  ;;  %v738_v24 = vadd.f32 %v2614_v42, %v2476_v34 }
 0x2ad   : > { %1227 = vrot.lane.b32.xlu0 %v1107_v63, %s2037_s29 }
 0x2b2   : > { %v1109_v60 = vpop.f32.mrf.mxu2 }
 0x2b3   : > { %v1110_v1 = vadd.f32 %v1109_v60, %v1036_v45 }
 0x2b5   : > { %1229 = vrot.lane.b32.xlu2 %v1110_v1, %s2037_s29 }
 0x2ba   : > { %v1111_v15 = vpop.f32.mrf.mxu2 }
 0x2bb   : > { %v1112_v16 = vadd.f32 %v1111_v15, %v1038_v48 }
 0x2bd   : > { %1231 = vrot.lane.b32.xlu0 %v1112_v16, %s2037_s29 }
 0x2bf   : > { %v1210_v43 = vpop.permute.xlu2 %1209 }
 0x2c0   : > { %v1257_v44 = vsel %vm307_vm0, %v728_v50, %v1210_v43 }
 0x2c1   : > { %v1273_v63 = vmul.f32 0.125, %v1257_v44 }
 0x2c2   : > { %v1114_v3 = vpop.f32.mrf.mxu2 }
 0x2c3   : > { %v1115_v14 = vadd.f32 %v1114_v3, %v1041_v2 }
 0x2c5   : > { %1233 = vrot.lane.b32.xlu2 %v1115_v14, %s2037_s29  ;;  %v1157_v14 = vpop.f32.mrf.mxu0 }
 0x2ca   : > { %v1116_v20 = vpop.f32.mrf.mxu2 }
 0x2cb   : > { %v1117_v9 = vadd.f32 %v1116_v20, %v1043_v22  ;;  %v1177_v22 = vadd.f32 %v1157_v14, %v2395_v61 }
 0x2cd   : > { %1235 = vrot.lane.b32.xlu0 %v1117_v9, %s2037_s29  ;;  %1185 = vst.msk [vmem:[#allocation2 + $0x40] sm:$0xff] %vm307_vm0, %v1177_v22 }
 0x2cf   : > { %v1214_v1 = vpop.permute.xlu2 %1213 }
 0x2d0   : > { %v1259_v39 = vsel %vm307_vm0, %v733_v17, %v1214_v1 }
 0x2d1   : > { %v1275_v16 = vmul.f32 0.125, %v1259_v39 }
 0x2d2   : > { %v1119_v31 = vpop.f32.mrf.mxu3 }
 0x2d3   : > { %v1120_v10 = vadd.f32 %v1119_v31, %v1046_v25 }
 0x2d5   : > { %1237 = vrot.lane.b32.xlu2 %v1120_v10, %s2037_s29 }
 0x2da   : > { %v1121_v30 = vpop.f32.mrf.mxu3 }
 0x2db   : > { %v1122_v8 = vadd.f32 %v1121_v30, %v1048_v7  ;;  %v1159_v7 = vpop.f32.mrf.mxu0 }
 0x2dc   : > { %v1178_v61 = vadd.f32 %v1159_v7, %v2397_v62 }
 0x2dd   : > { %1239 = vrot.lane.b32.xlu0 %v1122_v8, %s2037_s29 }
 0x2de   : > { %1186 = vst.msk [vmem:[#allocation2 + $0x48] sm:$0xff] %vm307_vm0, %v1178_v61 }
 0x2df   : > { %v1212_v45 = vpop.permute.xlu0 %1211  ;;  %v1218_v20 = vpop.permute.xlu2 %1217 }
 0x2e0   : > { %v1258_v38 = vsel %vm307_vm0, %v730_v40, %v1212_v45  ;;  %v1261_v36 = vsel %vm307_vm0, %v738_v24, %v1218_v20 }
 0x2e1   : > { %v1274_v48 = vmul.f32 0.125, %v1258_v38  ;;  %v1277_v25 = vmul.f32 0.125, %v1261_v36 }
 0x2e3   : > { %v1705_v60 = vpack.c.bf16 %v1274_v48, %v1273_v63  ;;  %v1162_v34 = vpop.f32.mrf.mxu0 }
 0x2e4   : > { %v1179_v42 = vadd.f32 %v1162_v34, %v2389_v58 }
 0x2e5   : > { %1706 = vst [vmem:[%s2691_s24] sm:$0xff] %v1705_v60  }
 0x2e6   : > { %1187 = vst.msk [vmem:[#allocation2 + $0x50] sm:$0xff] %vm307_vm0, %v1179_v42 }
 0x2eb   : > { %v1164_v45 = vpop.f32.mrf.mxu0 }
 0x2ec   : > { %v1180_v38 = vadd.f32 %v1164_v45, %v2391_v59 }
 0x2ee   : > { %1188 = vst.msk [vmem:[#allocation2 + $0x58] sm:$0xff] %vm307_vm0, %v1180_v38 }
 0x2ef   : > { %v1216_v0 = vpop.permute.xlu0 %1215  ;;  %v1222_v30 = vpop.permute.xlu2 %1221 }
 0x2f0   : > { %v1260_v15 = vsel %vm307_vm0, %v735_v21, %v1216_v0  ;;  %v1263_v43 = vsel %vm307_vm0, %v743_v41, %v1222_v30 }
 0x2f1   : > { %v1276_v2 = vmul.f32 0.125, %v1260_v15  ;;  %v1279_v50 = vmul.f32 0.125, %v1263_v43 }
 0x2f3   : > { %v1710_v3 = vpack.c.bf16 %v1276_v2, %v1275_v16  ;;  %v1167_v49 = vpop.f32.mrf.mxu0 }
 0x2f4   : > { %v1181_v57 = vadd.f32 %v1167_v49, %v2378_v54 }
 0x2f5   : > { %1742 = vst [vmem:[%s2691_s24 + $0x8] sm:$0xff] %v1710_v3  }
 0x2f6   : > { %1189 = vst.msk [vmem:[#allocation2 + $0x60] sm:$0xff] %vm307_vm0, %v1181_v57 }
 0x2fb   : > { %v1169_v21 = vpop.f32.mrf.mxu0 }
 0x2fc   : > { %v1182_v39 = vadd.f32 %v1169_v21, %v2380_v55 }
 0x2fe   : > { %1190 = vst.msk [vmem:[#allocation2 + $0x68] sm:$0xff] %vm307_vm0, %v1182_v39 }
 0x2ff   : > { %v1220_v4 = vpop.permute.xlu0 %1219  ;;  %v1226_v58 = vpop.permute.xlu2 %1225 }
 0x300   : > { %v1262_v9 = vsel %vm307_vm0, %v740_v27, %v1220_v4  ;;  %v1265_v63 = vsel %vm307_vm0, %v748_v56, %v1226_v58 }
 0x301   : > { %v1278_v31 = vmul.f32 0.125, %v1262_v9  ;;  %v1281_v60 = vmul.f32 0.125, %v1265_v63 }
 0x303   : > { %v1715_v10 = vpack.c.bf16 %v1278_v31, %v1277_v25  ;;  %v1172_v18 = vpop.f32.mrf.mxu0 }
 0x304   : > { %v1183_v11 = vadd.f32 %v1172_v18, %v2374_v52 }
 0x305   : > { %1743 = vst [vmem:[%s2691_s24 + $0x10] sm:$0xff] %v1715_v10  }
 0x306   : > { %1191 = vst.msk [vmem:[#allocation2 + $0x70] sm:$0xff] %vm307_vm0, %v1183_v11 }
 0x30b   : > { %v1174_v14 = vpop.f32.mrf.mxu0 }
 0x30c   : > { %v1184_v23 = vadd.f32 %v1174_v14, %v2376_v53 }
 0x30e   : > { %1192 = vst.msk [vmem:[#allocation2 + $0x78] sm:$0xff] %vm307_vm0, %v1184_v23 }
 0x30f   : > { %v1224_v8 = vpop.permute.xlu0 %1223  ;;  %v1230_v54 = vpop.permute.xlu2 %1229 }
 0x310   : > { %v1264_v62 = vsel %vm307_vm0, %v745_v46, %v1224_v8  ;;  %v1267_v0 = vsel %vm307_vm0, %v753_v51, %v1230_v54 }
 0x311   : > { %v1280_v40 = vmul.f32 0.125, %v1264_v62  ;;  %v1283_v16 = vmul.f32 0.125, %v1267_v0 }
 0x313   : > { %v1720_v44 = vpack.c.bf16 %v1280_v40, %v1279_v50 }
 0x315   : > { %1744 = vst [vmem:[%s2691_s24 + $0x18] sm:$0xff] %v1720_v44  }
 0x31f   : > { %v1228_v48 = vpop.permute.xlu0 %1227  ;;  %v1234_v52 = vpop.permute.xlu2 %1233 }
 0x320   : > { %v1266_v59 = vsel %vm307_vm0, %v750_v47, %v1228_v48  ;;  %v1269_v12 = vsel %vm307_vm0, %v758_v6, %v1234_v52 }
 0x321   : > { %v1282_v1 = vmul.f32 0.125, %v1266_v59  ;;  %v1285_v24 = vmul.f32 0.125, %v1269_v12 }
 0x323   : > { %v1725_v17 = vpack.c.bf16 %v1282_v1, %v1281_v60 }
 0x325   : > { %1745 = vst [vmem:[%s2691_s24 + $0x20] sm:$0xff] %v1725_v17  }
 0x32f   : > { %v1232_v15 = vpop.permute.xlu0 %1231  ;;  %v1238_v53 = vpop.permute.xlu2 %1237 }
 0x330   : > { %v1268_v55 = vsel %vm307_vm0, %v755_v19, %v1232_v15  ;;  %v1271_v28 = vsel %vm307_vm0, %v763_v13, %v1238_v53 }
 0x331   : > { %v1284_v2 = vmul.f32 0.125, %v1268_v55  ;;  %v1287_v9 = vmul.f32 0.125, %v1271_v28 }
 0x333   : > { %v1730_v3 = vpack.c.bf16 %v1284_v2, %v1283_v16 }
 0x335   : > { %1746 = vst [vmem:[%s2691_s24 + $0x28] sm:$0xff] %v1730_v3  }
 0x33f   : > { %v1236_v22 = vpop.permute.xlu0 %1235 }
 0x340   : > { %v1270_v20 = vsel %vm307_vm0, %v760_v32, %v1236_v22 }
 0x341   : > { %v1286_v27 = vmul.f32 0.125, %v1270_v20 }
 0x343   : > { %v1735_v36 = vpack.c.bf16 %v1286_v27, %v1285_v24 }
 0x345   : > { %1747 = vst [vmem:[%s2691_s24 + $0x30] sm:$0xff] %v1735_v36  }
 0x34f   : > { %v1240_v35 = vpop.permute.xlu0 %1239 }
 0x350   : > { %v1272_v4 = vsel %vm307_vm0, %v765_v29, %v1240_v35 }
 0x351   : > { %v1288_v25 = vmul.f32 0.125, %v1272_v4 }
 0x353   : > { %v1740_v31 = vpack.c.bf16 %v1288_v25, %v1287_v9 }
 0x355   : > { %1748 = vst [vmem:[%s2691_s24 + $0x38] sm:$0xff] %v1740_v31  }
 0x356   : > { %1974 = shalt.err (!%p1971_p13)
}
 0x357   : > { %s2039_s1 = smov 4  }
 0x358   : > { %1786 = dma.vmem_to_hbm [thread:$0]  (%p2116_p9), %s1337_s22, 1024, %s1339_s15, %s1322_s23, %s2037_s29, %s2037_s29, %s2039_s1  }
 0x359 PF: > { %s2838_s20 = sld [smem:[#allocation15_spill]]  ;;  %s1353_s28 = sand.u32 1, %s2013_s12  }
 0x35a   : > { %p1799_p0 = pnand %p1478_p12, %p2123_p11  ;;  %s1354_s16 = scalar_lea.sflag [#allocation5], %s1353_s28 }
 0x35c   : > { %p1800_p1 = pneg %p1799_p0 }
 0x35e   : > { %2008 = dma.done.wait (%p1800_p1), %s1354_s16, 1024  }
 0x35f   : > { %2010 = vsyncadd (%p1800_p1), %s1354_s16, 4294966272  ;;  %s22_s17 = sadd.s32 1, %s2838_s20   ;;  %s2839_s25 = sld [smem:[#allocation13_spill]] }
 0x360   : > { %p19_p2 = scmp.ge.s32.totalorder %s22_s17, 4   ;;  %s2840_s14 = sld [smem:[#allocation17_spill]] }
 0x361   : > { %s2841_s15 = sld [smem:[#allocation14_spill]]  ;;  %s2843_s12 = smov %s2017_s13 }
 0x362   : > { %s2842_s16 = sld [smem:[#allocation16_spill]]  ;;  %21 = sbr.rel (!%p19_p2) target bundleno = 10 (0xa), region = 106 }
 0x365   : > { %s2844_s13 = smov %s2839_s25 }
 0x367   :  { %1360 = vsyncpa [#allocation4], 1 }
 0x368   :  { %1362 = vsyncpa [#allocation4 + $0x1], 1 }
 0x369   :  { %1363 = vsyncpa [#allocation7], 1 }
 0x36a   :  { %1365 = vsyncpa [#allocation7 + $0x1], 1 }
 0x36b   :  { %1366 = vsyncpa [#allocation5], 1 }
 0x36c   :  { %1368 = vsyncpa [#allocation5 + $0x1], 1 }

</bundles_post_ra>
